<compile_context>
chip_gen: v7x
topology: tpu7x:2x2x1
jax: 0.10.0
libtpu: 0.0.40
codegen_flags: <defaults>
</compile_context>

<pallas_src>
import jax
import jax.numpy as jnp
from jax.experimental import pallas as pl
from jax.experimental.pallas import tpu as pltpu


def _conv_bn_relu(x, w_taps, scale, shift, seq_len):
    """Fused Conv1d('same') + BatchNorm1d(eval) + ReLU on a batch-stacked
    (bt*L, C_in) activation in (rows, channels) layout.

    x       : (bt*L, C_in) f32
    w_taps  : list of K (C_in, C_out) bf16 tap matrices (pre-loaded values)
    scale   : (1, C_out) f32 = gamma / sqrt(var + eps)
    shift   : (1, C_out) f32 = scale * conv_bias + beta - scale * mean
    seq_len : L; taps reaching across a sequence boundary are masked to zero
              (equivalent to per-sequence zero padding).
    """
    n_rows = x.shape[0]
    k_taps = len(w_taps)
    pad = k_taps // 2
    pos = jax.lax.broadcasted_iota(jnp.int32, (n_rows, 1), 0) % seq_len

    acc = None
    for k in range(k_taps):                    # K is small & static -> unrolled
        off = k - pad                          # tap[r, :] = x[r + off, :] (0-padded)
        if off == 0:
            tap = x
        else:
            # Sublane rotate (XLU slot, otherwise idle here) + edge mask instead
            # of materializing a padded copy / unaligned per-tap slices.
            tap = pltpu.roll(x, (-off) % n_rows, 0)
            valid = jnp.logical_and(pos + off >= 0, pos + off < seq_len)
            tap = jnp.where(valid, tap, 0.0)
        term = jnp.dot(tap.astype(jnp.bfloat16), w_taps[k],
                       preferred_element_type=jnp.float32)
        acc = term if acc is None else acc + term
    return jnp.maximum(acc * scale + shift, 0.0)


def _residual_bpp_attention_kernel(src_ref, attn_ref,
                                   w1_ref, s1_ref, t1_ref,
                                   w2_ref, s2_ref, t2_ref,
                                   out_ref, x_acc):
    bt, seq_len, _ = src_ref.shape
    tm = attn_ref.shape[1]
    m_idx = pl.program_id(1)

    @pl.when(m_idx == 0)
    def _init():
        x_acc[...] = jnp.zeros_like(x_acc)

    # Contraction step: x[l, c] += sum_m attn[m, l] * src[m, c]
    # (transposed-LHS MXU matmul, bf16 in / f32 accumulate, (L, C) layout).
    m_off = pl.multiple_of(m_idx * tm, tm)
    for b in range(bt):                        # static unroll over the batch tile
        attn_blk = attn_ref[b].astype(jnp.bfloat16)                        # (tm, L)
        src_rows = src_ref[b, pl.ds(m_off, tm), :].astype(jnp.bfloat16)    # (tm, C)
        contrib = jax.lax.dot_general(attn_blk, src_rows,
                                      (((0,), (0,)), ((), ())),
                                      preferred_element_type=jnp.float32)  # (L, C)
        rows = pl.ds(b * seq_len, seq_len)
        x_acc[rows, :] = x_acc[rows, :] + contrib

    # Finalize: conv stack + residual, once per output block (last m step).
    @pl.when(m_idx == pl.num_programs(1) - 1)
    def _finalize():
        k_taps = w1_ref.shape[0]
        # Hoisted parameter loads (once per grid step, not per batch / per use).
        w1 = [w1_ref[k] for k in range(k_taps)]
        w2 = [w2_ref[k] for k in range(k_taps)]
        s1, t1 = s1_ref[...], t1_ref[...]
        s2, t2 = s2_ref[...], t2_ref[...]

        h = _conv_bn_relu(x_acc[...], w1, s1, t1, seq_len)
        h = _conv_bn_relu(h, w2, s2, t2, seq_len)

        for b in range(bt):
            hb = h[b * seq_len:(b + 1) * seq_len, :]   # static value slice
            out_ref[b] = jnp.maximum(src_ref[b] + hb, 0.0).astype(out_ref.dtype)


def residual_bpp_attention(src, attn, params, *,
                           batch_block=None, m_block=None, vmem_limit_bytes=None):
    B, L, C = src.shape
    K = params["w1"].shape[0]

    # ---- generation-aware sizing (v5e/v6e: 128 MiB VMEM, v7x: 64 MiB) ----
    try:
        vmem_cap = int(pltpu.get_tpu_info().vmem_capacity_bytes)
    except Exception:
        vmem_cap = 64 * 1024 * 1024                     # conservative (v7x per-TC)
    budget = int(vmem_cap * 0.70)

    attn_bytes = attn.dtype.itemsize
    src_bytes = src.dtype.itemsize
    w_bytes = 2 * (K * C * C * params["w1"].dtype.itemsize + 2 * C * 4)

    def vmem_need(bt_, tm_):
        return (2 * bt_ * tm_ * L * attn_bytes          # attn row blocks (x2 buffers)
                + 2 * bt_ * L * C * src_bytes           # src block       (x2 buffers)
                + 2 * bt_ * L * C * src_bytes           # out block       (x2 buffers)
                + bt_ * L * C * 4                       # x accumulator scratch (f32)
                + 2 * w_bytes)                          # conv weights / scale / shift

    # Batch tile: default 1 so the 'parallel' grid axis has >= 2 steps whenever
    # B >= 2 (feeds both v7x TensorCores); on v5e/v6e (big VMEM) grow it while
    # that property and the VMEM budget still hold, to amortize per-step cost.
    if batch_block is None:
        bt = 1
        if vmem_cap >= 96 * 1024 * 1024:
            while (B % (bt * 2) == 0 and B // (bt * 2) >= 2
                   and vmem_need(bt * 2, L) <= budget):
                bt *= 2
    else:
        bt = batch_block
    assert B % bt == 0, "batch_block must divide the batch size"

    # Contraction (attn-row) tile: largest divisor of L (multiple of 8, or L
    # itself) whose working set fits the per-generation VMEM budget.
    if m_block is None:
        cands = sorted({L} | {d for d in range(8, L, 8) if L % d == 0},
                       reverse=True)
        tm = cands[-1]
        for d in cands:
            if vmem_need(bt, d) <= budget:
                tm = d
                break
    else:
        tm = m_block
    assert L % tm == 0, "m_block must divide the sequence length"
    n_m = L // tm

    if vmem_limit_bytes is None:
        need = vmem_need(bt, tm)
        vmem_limit_bytes = max(32 * 1024 * 1024, int(need * 1.25) + (2 << 20))
        vmem_limit_bytes = min(vmem_limit_bytes, int(vmem_cap * 0.85))

    grid_spec = pltpu.PrefetchScalarGridSpec(
        num_scalar_prefetch=0,
        grid=(B // bt, n_m),
        in_specs=[
            pl.BlockSpec((bt, L, C), lambda b, m: (b, 0, 0)),    # src (m-resident)
            pl.BlockSpec((bt, tm, L), lambda b, m: (b, m, 0)),   # attn row block
            pl.BlockSpec((K, C, C), lambda b, m: (0, 0, 0)),     # conv1 W (K,Cin,Cout)
            pl.BlockSpec((1, C), lambda b, m: (0, 0)),           # scale1 (1, C)
            pl.BlockSpec((1, C), lambda b, m: (0, 0)),           # shift1 (1, C)
            pl.BlockSpec((K, C, C), lambda b, m: (0, 0, 0)),     # conv2 W
            pl.BlockSpec((1, C), lambda b, m: (0, 0)),           # scale2
            pl.BlockSpec((1, C), lambda b, m: (0, 0)),           # shift2
        ],
        out_specs=pl.BlockSpec((bt, L, C), lambda b, m: (b, 0, 0)),
        scratch_shapes=[pltpu.VMEM((bt * L, C), jnp.float32)],
    )

    flops = B * (2 * L * L * C + 4 * K * L * C * C)
    bytes_accessed = 2 * src.size * src_bytes + attn.size * attn_bytes + w_bytes
    cost = pl.CostEstimate(flops=flops, transcendentals=0,
                           bytes_accessed=bytes_accessed)

    return pl.pallas_call(
        _residual_bpp_attention_kernel,
        out_shape=jax.ShapeDtypeStruct((B, L, C), src.dtype),
        grid_spec=grid_spec,
        compiler_params=pltpu.CompilerParams(
            dimension_semantics=("parallel", "arbitrary"),
            vmem_limit_bytes=int(vmem_limit_bytes)),
        cost_estimate=cost,
    )(src, attn,
      params["w1"], params["s1"], params["t1"],
      params["w2"], params["s2"], params["t2"])


def make_params(key, d_model, kernel_size, eps=1e-5):
    """Deterministic synthetic parameters for the two Conv blocks.

    Returns (raw torch-layout params for the reference, folded kernel params):
      folded w  : (K, C_in, C_out) bf16  (MXU operand for the (L,C) layout)
      folded s/t: (1, C) f32 per-channel BN(eval)+bias scale/shift rows
    """
    ks = jax.random.split(key, 12)
    raw, folded = {}, {}
    for i in range(2):
        kw, kb, kg, kbeta, km, kv = ks[6 * i: 6 * i + 6]
        w = 0.1 * jax.random.normal(kw, (d_model, d_model, kernel_size), jnp.float32)
        b = 0.05 * jax.random.normal(kb, (d_model,), jnp.float32)
        gamma = 1.0 + 0.1 * jax.random.normal(kg, (d_model,), jnp.float32)
        beta = 0.05 * jax.random.normal(kbeta, (d_model,), jnp.float32)
        mean = 0.1 * jax.random.normal(km, (d_model,), jnp.float32)
        var = 1.0 + 0.1 * jnp.abs(jax.random.normal(kv, (d_model,), jnp.float32))
        scale = gamma / jnp.sqrt(var + eps)
        shift = scale * b + beta - scale * mean
        idx = str(i + 1)
        raw.update({"w" + idx: w, "b" + idx: b, "gamma" + idx: gamma,
                    "beta" + idx: beta, "mean" + idx: mean, "var" + idx: var})
        folded["w" + idx] = jnp.transpose(w, (2, 1, 0)).astype(jnp.bfloat16)
        folded["s" + idx] = scale.reshape(1, d_model)
        folded["t" + idx] = shift.reshape(1, d_model)
    return raw, folded


def reference_forward(src, attn, raw, kernel_size, eps=1e-5):
    """Pure-JAX f32 reference (eval-mode BN, dropout = identity)."""
    pad = kernel_size // 2

    def conv_block(x, w, b, gamma, beta, mean, var):
        y = jax.lax.conv_general_dilated(
            x, w, window_strides=(1,), padding=[(pad, pad)],
            dimension_numbers=("NCH", "OIH", "NCH"))
        y = y + b[None, :, None]
        y = gamma[None, :, None] * (y - mean[None, :, None]) / \
            jnp.sqrt(var[None, :, None] + eps) + beta[None, :, None]
        return jnp.maximum(y, 0.0)

    src_t = jnp.transpose(src, (0, 2, 1))                      # (B, C, L)
    x = jnp.einsum("bcl,blm->bcm", src_t, attn)
    h = conv_block(x, raw["w1"], raw["b1"], raw["gamma1"], raw["beta1"],
                   raw["mean1"], raw["var1"])
    h = conv_block(h, raw["w2"], raw["b2"], raw["gamma2"], raw["beta2"],
                   raw["mean2"], raw["var2"])
    out = jnp.maximum(src_t + h, 0.0)
    return jnp.transpose(out, (0, 2, 1))


if __name__ == "__main__":
    B, L, d_model, K = 2, 16, 32, 3
    key = jax.random.PRNGKey(0)
    k_src, k_attn, k_par = jax.random.split(key, 3)

    src = jax.random.normal(k_src, (B, L, d_model), jnp.float32)
    attn = jax.nn.softmax(jax.random.normal(k_attn, (B, L, L), jnp.float32), axis=-1)

    raw_params, folded_params = make_params(k_par, d_model, K)

    out = residual_bpp_attention(src, attn, folded_params)
    out = jax.block_until_ready(out)

    ref = reference_forward(src, attn, raw_params, K)
    assert out.shape == (B, L, d_model)
    assert jnp.allclose(out, ref, rtol=5e-2, atol=5e-2), \
        f"max abs diff {jnp.max(jnp.abs(out - ref))}"

    print("KERNEL_OK")
</pallas_src>

<mosaic_0001>
module attributes {stable_mosaic.version = 11 : i64} {
  func.func @_residual_bpp_attention_kernel(%arg0: i32, %arg1: i32, %arg2: memref<1x16x32xf32, #tpu.memory_space<vmem>>, %arg3: memref<1x16x16xf32, #tpu.memory_space<vmem>>, %arg4: memref<3x32x32xbf16, #tpu.memory_space<vmem>>, %arg5: memref<1x32xf32, #tpu.memory_space<vmem>>, %arg6: memref<1x32xf32, #tpu.memory_space<vmem>>, %arg7: memref<3x32x32xbf16, #tpu.memory_space<vmem>>, %arg8: memref<1x32xf32, #tpu.memory_space<vmem>>, %arg9: memref<1x32xf32, #tpu.memory_space<vmem>>, %arg10: memref<1x16x32xf32, #tpu.memory_space<vmem>>, %arg11: memref<16x32xf32, #tpu.memory_space<vmem>>) attributes {dimension_semantics = [#tpu.dimension_semantics<parallel>, #tpu.dimension_semantics<arbitrary>], iteration_bounds = array<i64: 2, 1>, scalar_prefetch = 0 : i64, scratch_operands = 1 : i64, tpu.core_type = #tpu.core_type<tc>, window_params = [{transform_indices = @transform_0, window_bounds = array<i64: 1, 16, 32>}, {transform_indices = @transform_1, window_bounds = array<i64: 1, 16, 16>}, {pipeline_mode = #tpu.pipeline_mode<synchronous>, transform_indices = @transform_2, window_bounds = array<i64: 3, 32, 32>}, {pipeline_mode = #tpu.pipeline_mode<synchronous>, transform_indices = @transform_3, window_bounds = array<i64: 1, 32>}, {pipeline_mode = #tpu.pipeline_mode<synchronous>, transform_indices = @transform_4, window_bounds = array<i64: 1, 32>}, {pipeline_mode = #tpu.pipeline_mode<synchronous>, transform_indices = @transform_5, window_bounds = array<i64: 3, 32, 32>}, {pipeline_mode = #tpu.pipeline_mode<synchronous>, transform_indices = @transform_6, window_bounds = array<i64: 1, 32>}, {pipeline_mode = #tpu.pipeline_mode<synchronous>, transform_indices = @transform_7, window_bounds = array<i64: 1, 32>}, {transform_indices = @transform_8, window_bounds = array<i64: 1, 16, 32>}]} {
    %c0_i32 = arith.constant 0 : i32
    %0 = arith.cmpi eq, %arg1, %c0_i32 : i32
    %1 = arith.extui %0 : i1 to i32
    %c0_i32_0 = arith.constant 0 : i32
    %2 = arith.cmpi ne, %1, %c0_i32_0 : i32
    scf.if %2 {
      %cst_11 = arith.constant 0.000000e+00 : f32
      %19 = vector.broadcast %cst_11 : f32 to vector<16x32xf32>
      %c0_12 = arith.constant 0 : index
      %c0_13 = arith.constant 0 : index
      %20 = vector.load %arg11[%c0_12, %c0_13] : memref<16x32xf32, #tpu.memory_space<vmem>>, vector<16x32xf32>
      tpu.vector_store %arg11[%c0_12, %c0_13], %19 {strides = array<i32>} : memref<16x32xf32, #tpu.memory_space<vmem>>, vector<16x32xf32>,
    } else {
    }
    %c16_i32 = arith.constant 16 : i32
    %3 = arith.muli %arg1, %c16_i32 : i32
    %4 = tpu.assume_multiple %3, 16 : i32
    %c0 = arith.constant 0 : index
    %c0_1 = arith.constant 0 : index
    %c0_2 = arith.constant 0 : index
    %5 = vector.load %arg3[%c0, %c0_1, %c0_2] : memref<1x16x16xf32, #tpu.memory_space<vmem>>, vector<1x16x16xf32>
    %6 = vector.shape_cast %5 : vector<1x16x16xf32> to vector<16x16xf32>
    %7 = arith.truncf %6 : vector<16x16xf32> to vector<16x16xbf16>
    %c0_3 = arith.constant 0 : index
    %8 = arith.index_cast %4 : i32 to index
    %c0_4 = arith.constant 0 : index
    %9 = vector.load %arg2[%c0_3, %8, %c0_4] : memref<1x16x32xf32, #tpu.memory_space<vmem>>, vector<1x16x32xf32>
    %10 = vector.shape_cast %9 : vector<1x16x32xf32> to vector<16x32xf32>
    %11 = arith.truncf %10 : vector<16x32xf32> to vector<16x32xbf16>
    %cst = arith.constant dense<0.000000e+00> : vector<16x32xf32>
    %12 = tpu.matmul %7, %11, %cst {dimension_numbers = #tpu.dot_dimension_numbers<[0], [0], [1], [1], [0, 1, 1, 1], [], []>} : vector<16x16xbf16>, vector<16x32xbf16>, vector<16x32xf32> -> vector<16x32xf32>
    %c0_5 = arith.constant 0 : index
    %c0_6 = arith.constant 0 : index
    %13 = vector.load %arg11[%c0_5, %c0_6] : memref<16x32xf32, #tpu.memory_space<vmem>>, vector<16x32xf32>
    %14 = arith.addf %13, %12 : vector<16x32xf32>
    %c0_7 = arith.constant 0 : index
    %c0_8 = arith.constant 0 : index
    %15 = vector.load %arg11[%c0_7, %c0_8] : memref<16x32xf32, #tpu.memory_space<vmem>>, vector<16x32xf32>
    tpu.vector_store %arg11[%c0_7, %c0_8], %14 {strides = array<i32>} : memref<16x32xf32, #tpu.memory_space<vmem>>, vector<16x32xf32>,
    %c0_i32_9 = arith.constant 0 : i32
    %16 = arith.cmpi eq, %arg1, %c0_i32_9 : i32
    %17 = arith.extui %16 : i1 to i32
    %c0_i32_10 = arith.constant 0 : i32
    %18 = arith.cmpi ne, %17, %c0_i32_10 : i32
    scf.if %18 {
      %c0_11 = arith.constant 0 : index
      %c0_12 = arith.constant 0 : index
      %c0_13 = arith.constant 0 : index
      %19 = vector.load %arg4[%c0_11, %c0_12, %c0_13] : memref<3x32x32xbf16, #tpu.memory_space<vmem>>, vector<1x32x32xbf16>
      %20 = vector.shape_cast %19 : vector<1x32x32xbf16> to vector<32x32xbf16>
      %c1 = arith.constant 1 : index
      %c0_14 = arith.constant 0 : index
      %c0_15 = arith.constant 0 : index
      %21 = vector.load %arg4[%c1, %c0_14, %c0_15] : memref<3x32x32xbf16, #tpu.memory_space<vmem>>, vector<1x32x32xbf16>
      %22 = vector.shape_cast %21 : vector<1x32x32xbf16> to vector<32x32xbf16>
      %c2 = arith.constant 2 : index
      %c0_16 = arith.constant 0 : index
      %c0_17 = arith.constant 0 : index
      %23 = vector.load %arg4[%c2, %c0_16, %c0_17] : memref<3x32x32xbf16, #tpu.memory_space<vmem>>, vector<1x32x32xbf16>
      %24 = vector.shape_cast %23 : vector<1x32x32xbf16> to vector<32x32xbf16>
      %c0_18 = arith.constant 0 : index
      %c0_19 = arith.constant 0 : index
      %c0_20 = arith.constant 0 : index
      %25 = vector.load %arg7[%c0_18, %c0_19, %c0_20] : memref<3x32x32xbf16, #tpu.memory_space<vmem>>, vector<1x32x32xbf16>
      %26 = vector.shape_cast %25 : vector<1x32x32xbf16> to vector<32x32xbf16>
      %c1_21 = arith.constant 1 : index
      %c0_22 = arith.constant 0 : index
      %c0_23 = arith.constant 0 : index
      %27 = vector.load %arg7[%c1_21, %c0_22, %c0_23] : memref<3x32x32xbf16, #tpu.memory_space<vmem>>, vector<1x32x32xbf16>
      %28 = vector.shape_cast %27 : vector<1x32x32xbf16> to vector<32x32xbf16>
      %c2_24 = arith.constant 2 : index
      %c0_25 = arith.constant 0 : index
      %c0_26 = arith.constant 0 : index
      %29 = vector.load %arg7[%c2_24, %c0_25, %c0_26] : memref<3x32x32xbf16, #tpu.memory_space<vmem>>, vector<1x32x32xbf16>
      %30 = vector.shape_cast %29 : vector<1x32x32xbf16> to vector<32x32xbf16>
      %c0_27 = arith.constant 0 : index
      %c0_28 = arith.constant 0 : index
      %31 = vector.load %arg5[%c0_27, %c0_28] : memref<1x32xf32, #tpu.memory_space<vmem>>, vector<1x32xf32>
      %c0_29 = arith.constant 0 : index
      %c0_30 = arith.constant 0 : index
      %32 = vector.load %arg6[%c0_29, %c0_30] : memref<1x32xf32, #tpu.memory_space<vmem>>, vector<1x32xf32>
      %c0_31 = arith.constant 0 : index
      %c0_32 = arith.constant 0 : index
      %33 = vector.load %arg8[%c0_31, %c0_32] : memref<1x32xf32, #tpu.memory_space<vmem>>, vector<1x32xf32>
      %c0_33 = arith.constant 0 : index
      %c0_34 = arith.constant 0 : index
      %34 = vector.load %arg9[%c0_33, %c0_34] : memref<1x32xf32, #tpu.memory_space<vmem>>, vector<1x32xf32>
      %c0_35 = arith.constant 0 : index
      %c0_36 = arith.constant 0 : index
      %35 = vector.load %arg11[%c0_35, %c0_36] : memref<16x32xf32, #tpu.memory_space<vmem>>, vector<16x32xf32>
      %36 = tpu.iota {dimensions = array<i32: 0>} : vector<16x1xi32>
      %c16_i32_37 = arith.constant 16 : i32
      %c0_i32_38 = arith.constant 0 : i32
      %37 = arith.cmpi eq, %c16_i32_37, %c0_i32_38 : i32
      %c1_i32 = arith.constant 1 : i32
      %38 = arith.select %37, %c1_i32, %c16_i32_37 : i32
      %39 = vector.broadcast %38 : i32 to vector<16x1xi32>
      %40 = arith.remsi %36, %39 : vector<16x1xi32>
      %c0_i32_39 = arith.constant 0 : i32
      %41 = vector.broadcast %c0_i32_39 : i32 to vector<16x1xi32>
      %42 = arith.cmpi ne, %40, %41 : vector<16x1xi32>
      %c0_i32_40 = arith.constant 0 : i32
      %43 = vector.broadcast %c0_i32_40 : i32 to vector<16x1xi32>
      %44 = arith.cmpi slt, %40, %43 : vector<16x1xi32>
      %c0_i32_41 = arith.constant 0 : i32
      %45 = arith.cmpi slt, %38, %c0_i32_41 : i32
      %46 = vector.broadcast %45 : i1 to vector<16x1xi1>
      %47 = vector.broadcast %46 : vector<16x1xi1> to vector<16x1xi1>
      %48 = arith.xori %44, %47 : vector<16x1xi1>
      %49 = arith.andi %48, %42 : vector<16x1xi1>
      %50 = vector.broadcast %38 : i32 to vector<16x1xi32>
      %51 = arith.addi %40, %50 : vector<16x1xi32>
      %52 = arith.select %49, %51, %40 : vector<16x1xi1>, vector<16x1xi32>
      %c1_i32_42 = arith.constant 1 : i32
      %53 = tpu.dynamic_rotate %35 by %c1_i32_42 dim 0 : vector<16x32xf32>, i32 -> vector<16x32xf32>
      %c-1_i32 = arith.constant -1 : i32
      %54 = vector.broadcast %c-1_i32 : i32 to vector<16x1xi32>
      %55 = arith.addi %52, %54 : vector<16x1xi32>
      %c0_i32_43 = arith.constant 0 : i32
      %56 = vector.broadcast %c0_i32_43 : i32 to vector<16x1xi32>
      %57 = arith.cmpi sge, %55, %56 : vector<16x1xi32>
      %c-1_i32_44 = arith.constant -1 : i32
      %58 = vector.broadcast %c-1_i32_44 : i32 to vector<16x1xi32>
      %59 = arith.addi %52, %58 : vector<16x1xi32>
      %c16_i32_45 = arith.constant 16 : i32
      %60 = vector.broadcast %c16_i32_45 : i32 to vector<16x1xi32>
      %61 = arith.cmpi slt, %59, %60 : vector<16x1xi32>
      %62 = arith.andi %57, %61 : vector<16x1xi1>
      %cst_46 = arith.constant 0.000000e+00 : f32
      %63 = vector.shape_cast %62 : vector<16x1xi1> to vector<16x1xi1>
      %64 = vector.broadcast %63 : vector<16x1xi1> to vector<16x32xi1>
      %65 = vector.broadcast %cst_46 : f32 to vector<16x32xf32>
      %66 = arith.select %64, %53, %65 : vector<16x32xi1>, vector<16x32xf32>
      %67 = arith.truncf %66 : vector<16x32xf32> to vector<16x32xbf16>
      %cst_47 = arith.constant dense<0.000000e+00> : vector<16x32xf32>
      %68 = tpu.matmul %67, %20, %cst_47 {dimension_numbers = #tpu.dot_dimension_numbers<[1], [0], [0], [1], [0, 0, 1, 1], [], []>} : vector<16x32xbf16>, vector<32x32xbf16>, vector<16x32xf32> -> vector<16x32xf32>
      %69 = arith.truncf %35 : vector<16x32xf32> to vector<16x32xbf16>
      %cst_48 = arith.constant dense<0.000000e+00> : vector<16x32xf32>
      %70 = tpu.matmul %69, %22, %cst_48 {dimension_numbers = #tpu.dot_dimension_numbers<[1], [0], [0], [1], [0, 0, 1, 1], [], []>} : vector<16x32xbf16>, vector<32x32xbf16>, vector<16x32xf32> -> vector<16x32xf32>
      %71 = arith.addf %68, %70 : vector<16x32xf32>
      %c15_i32 = arith.constant 15 : i32
      %72 = tpu.dynamic_rotate %35 by %c15_i32 dim 0 : vector<16x32xf32>, i32 -> vector<16x32xf32>
      %c1_i32_49 = arith.constant 1 : i32
      %73 = vector.broadcast %c1_i32_49 : i32 to vector<16x1xi32>
      %74 = arith.addi %52, %73 : vector<16x1xi32>
      %c0_i32_50 = arith.constant 0 : i32
      %75 = vector.broadcast %c0_i32_50 : i32 to vector<16x1xi32>
      %76 = arith.cmpi sge, %74, %75 : vector<16x1xi32>
      %c1_i32_51 = arith.constant 1 : i32
      %77 = vector.broadcast %c1_i32_51 : i32 to vector<16x1xi32>
      %78 = arith.addi %52, %77 : vector<16x1xi32>
      %c16_i32_52 = arith.constant 16 : i32
      %79 = vector.broadcast %c16_i32_52 : i32 to vector<16x1xi32>
      %80 = arith.cmpi slt, %78, %79 : vector<16x1xi32>
      %81 = arith.andi %76, %80 : vector<16x1xi1>
      %cst_53 = arith.constant 0.000000e+00 : f32
      %82 = vector.shape_cast %81 : vector<16x1xi1> to vector<16x1xi1>
      %83 = vector.broadcast %82 : vector<16x1xi1> to vector<16x32xi1>
      %84 = vector.broadcast %cst_53 : f32 to vector<16x32xf32>
      %85 = arith.select %83, %72, %84 : vector<16x32xi1>, vector<16x32xf32>
      %86 = arith.truncf %85 : vector<16x32xf32> to vector<16x32xbf16>
      %cst_54 = arith.constant dense<0.000000e+00> : vector<16x32xf32>
      %87 = tpu.matmul %86, %24, %cst_54 {dimension_numbers = #tpu.dot_dimension_numbers<[1], [0], [0], [1], [0, 0, 1, 1], [], []>} : vector<16x32xbf16>, vector<32x32xbf16>, vector<16x32xf32> -> vector<16x32xf32>
      %88 = arith.addf %71, %87 : vector<16x32xf32>
      %89 = vector.broadcast %31 : vector<1x32xf32> to vector<16x32xf32>
      %90 = arith.mulf %88, %89 : vector<16x32xf32>
      %91 = vector.broadcast %32 : vector<1x32xf32> to vector<16x32xf32>
      %92 = arith.addf %90, %91 : vector<16x32xf32>
      %cst_55 = arith.constant 0.000000e+00 : f32
      %93 = vector.broadcast %cst_55 : f32 to vector<16x32xf32>
      %94 = arith.maximumf %92, %93 : vector<16x32xf32>
      %95 = tpu.iota {dimensions = array<i32: 0>} : vector<16x1xi32>
      %c16_i32_56 = arith.constant 16 : i32
      %c0_i32_57 = arith.constant 0 : i32
      %96 = arith.cmpi eq, %c16_i32_56, %c0_i32_57 : i32
      %c1_i32_58 = arith.constant 1 : i32
      %97 = arith.select %96, %c1_i32_58, %c16_i32_56 : i32
      %98 = vector.broadcast %97 : i32 to vector<16x1xi32>
      %99 = arith.remsi %95, %98 : vector<16x1xi32>
      %c0_i32_59 = arith.constant 0 : i32
      %100 = vector.broadcast %c0_i32_59 : i32 to vector<16x1xi32>
      %101 = arith.cmpi ne, %99, %100 : vector<16x1xi32>
      %c0_i32_60 = arith.constant 0 : i32
      %102 = vector.broadcast %c0_i32_60 : i32 to vector<16x1xi32>
      %103 = arith.cmpi slt, %99, %102 : vector<16x1xi32>
      %c0_i32_61 = arith.constant 0 : i32
      %104 = arith.cmpi slt, %97, %c0_i32_61 : i32
      %105 = vector.broadcast %104 : i1 to vector<16x1xi1>
      %106 = vector.broadcast %105 : vector<16x1xi1> to vector<16x1xi1>
      %107 = arith.xori %103, %106 : vector<16x1xi1>
      %108 = arith.andi %107, %101 : vector<16x1xi1>
      %109 = vector.broadcast %97 : i32 to vector<16x1xi32>
      %110 = arith.addi %99, %109 : vector<16x1xi32>
      %111 = arith.select %108, %110, %99 : vector<16x1xi1>, vector<16x1xi32>
      %c1_i32_62 = arith.constant 1 : i32
      %112 = tpu.dynamic_rotate %94 by %c1_i32_62 dim 0 : vector<16x32xf32>, i32 -> vector<16x32xf32>
      %c-1_i32_63 = arith.constant -1 : i32
      %113 = vector.broadcast %c-1_i32_63 : i32 to vector<16x1xi32>
      %114 = arith.addi %111, %113 : vector<16x1xi32>
      %c0_i32_64 = arith.constant 0 : i32
      %115 = vector.broadcast %c0_i32_64 : i32 to vector<16x1xi32>
      %116 = arith.cmpi sge, %114, %115 : vector<16x1xi32>
      %c-1_i32_65 = arith.constant -1 : i32
      %117 = vector.broadcast %c-1_i32_65 : i32 to vector<16x1xi32>
      %118 = arith.addi %111, %117 : vector<16x1xi32>
      %c16_i32_66 = arith.constant 16 : i32
      %119 = vector.broadcast %c16_i32_66 : i32 to vector<16x1xi32>
      %120 = arith.cmpi slt, %118, %119 : vector<16x1xi32>
      %121 = arith.andi %116, %120 : vector<16x1xi1>
      %cst_67 = arith.constant 0.000000e+00 : f32
      %122 = vector.shape_cast %121 : vector<16x1xi1> to vector<16x1xi1>
      %123 = vector.broadcast %122 : vector<16x1xi1> to vector<16x32xi1>
      %124 = vector.broadcast %cst_67 : f32 to vector<16x32xf32>
      %125 = arith.select %123, %112, %124 : vector<16x32xi1>, vector<16x32xf32>
      %126 = arith.truncf %125 : vector<16x32xf32> to vector<16x32xbf16>
      %cst_68 = arith.constant dense<0.000000e+00> : vector<16x32xf32>
      %127 = tpu.matmul %126, %26, %cst_68 {dimension_numbers = #tpu.dot_dimension_numbers<[1], [0], [0], [1], [0, 0, 1, 1], [], []>} : vector<16x32xbf16>, vector<32x32xbf16>, vector<16x32xf32> -> vector<16x32xf32>
      %128 = arith.truncf %94 : vector<16x32xf32> to vector<16x32xbf16>
      %cst_69 = arith.constant dense<0.000000e+00> : vector<16x32xf32>
      %129 = tpu.matmul %128, %28, %cst_69 {dimension_numbers = #tpu.dot_dimension_numbers<[1], [0], [0], [1], [0, 0, 1, 1], [], []>} : vector<16x32xbf16>, vector<32x32xbf16>, vector<16x32xf32> -> vector<16x32xf32>
      %130 = arith.addf %127, %129 : vector<16x32xf32>
      %c15_i32_70 = arith.constant 15 : i32
      %131 = tpu.dynamic_rotate %94 by %c15_i32_70 dim 0 : vector<16x32xf32>, i32 -> vector<16x32xf32>
      %c1_i32_71 = arith.constant 1 : i32
      %132 = vector.broadcast %c1_i32_71 : i32 to vector<16x1xi32>
      %133 = arith.addi %111, %132 : vector<16x1xi32>
      %c0_i32_72 = arith.constant 0 : i32
      %134 = vector.broadcast %c0_i32_72 : i32 to vector<16x1xi32>
      %135 = arith.cmpi sge, %133, %134 : vector<16x1xi32>
      %c1_i32_73 = arith.constant 1 : i32
      %136 = vector.broadcast %c1_i32_73 : i32 to vector<16x1xi32>
      %137 = arith.addi %111, %136 : vector<16x1xi32>
      %c16_i32_74 = arith.constant 16 : i32
      %138 = vector.broadcast %c16_i32_74 : i32 to vector<16x1xi32>
      %139 = arith.cmpi slt, %137, %138 : vector<16x1xi32>
      %140 = arith.andi %135, %139 : vector<16x1xi1>
      %cst_75 = arith.constant 0.000000e+00 : f32
      %141 = vector.shape_cast %140 : vector<16x1xi1> to vector<16x1xi1>
      %142 = vector.broadcast %141 : vector<16x1xi1> to vector<16x32xi1>
      %143 = vector.broadcast %cst_75 : f32 to vector<16x32xf32>
      %144 = arith.select %142, %131, %143 : vector<16x32xi1>, vector<16x32xf32>
      %145 = arith.truncf %144 : vector<16x32xf32> to vector<16x32xbf16>
      %cst_76 = arith.constant dense<0.000000e+00> : vector<16x32xf32>
      %146 = tpu.matmul %145, %30, %cst_76 {dimension_numbers = #tpu.dot_dimension_numbers<[1], [0], [0], [1], [0, 0, 1, 1], [], []>} : vector<16x32xbf16>, vector<32x32xbf16>, vector<16x32xf32> -> vector<16x32xf32>
      %147 = arith.addf %130, %146 : vector<16x32xf32>
      %148 = vector.broadcast %33 : vector<1x32xf32> to vector<16x32xf32>
      %149 = arith.mulf %147, %148 : vector<16x32xf32>
      %150 = vector.broadcast %34 : vector<1x32xf32> to vector<16x32xf32>
      %151 = arith.addf %149, %150 : vector<16x32xf32>
      %cst_77 = arith.constant 0.000000e+00 : f32
      %152 = vector.broadcast %cst_77 : f32 to vector<16x32xf32>
      %153 = arith.maximumf %151, %152 : vector<16x32xf32>
      %c0_78 = arith.constant 0 : index
      %c0_79 = arith.constant 0 : index
      %c0_80 = arith.constant 0 : index
      %154 = vector.load %arg2[%c0_78, %c0_79, %c0_80] : memref<1x16x32xf32, #tpu.memory_space<vmem>>, vector<1x16x32xf32>
      %155 = vector.shape_cast %154 : vector<1x16x32xf32> to vector<16x32xf32>
      %156 = arith.addf %155, %153 : vector<16x32xf32>
      %cst_81 = arith.constant 0.000000e+00 : f32
      %157 = vector.broadcast %cst_81 : f32 to vector<16x32xf32>
      %158 = arith.maximumf %156, %157 : vector<16x32xf32>
      %c0_82 = arith.constant 0 : index
      %c0_83 = arith.constant 0 : index
      %c0_84 = arith.constant 0 : index
      %159 = vector.load %arg10[%c0_82, %c0_83, %c0_84] : memref<1x16x32xf32, #tpu.memory_space<vmem>>, vector<1x16x32xf32>
      %160 = vector.shape_cast %159 : vector<1x16x32xf32> to vector<16x32xf32>
      %161 = vector.shape_cast %158 : vector<16x32xf32> to vector<1x16x32xf32>
      tpu.vector_store %arg10[%c0_82, %c0_83, %c0_84], %161 {strides = array<i32>} : memref<1x16x32xf32, #tpu.memory_space<vmem>>, vector<1x16x32xf32>,
    } else {
    }
    return
  }
  func.func @transform_0(%arg0: i32, %arg1: i32) -> (i32, i32, i32) {
    %c0_i32 = arith.constant 0 : i32
    %c0_i32_0 = arith.constant 0 : i32
    %c0_i32_1 = arith.constant 0 : i32
    return %arg0, %c0_i32, %c0_i32_0 : i32, i32, i32
  }
  func.func @transform_1(%arg0: i32, %arg1: i32) -> (i32, i32, i32) {
    %c0_i32 = arith.constant 0 : i32
    %c0_i32_0 = arith.constant 0 : i32
    return %arg0, %arg1, %c0_i32 : i32, i32, i32
  }
  func.func @transform_2(%arg0: i32, %arg1: i32) -> (i32, i32, i32) {
    %c0_i32 = arith.constant 0 : i32
    %c0_i32_0 = arith.constant 0 : i32
    %c0_i32_1 = arith.constant 0 : i32
    %c0_i32_2 = arith.constant 0 : i32
    return %c0_i32, %c0_i32_0, %c0_i32_1 : i32, i32, i32
  }
  func.func @transform_3(%arg0: i32, %arg1: i32) -> (i32, i32) {
    %c0_i32 = arith.constant 0 : i32
    %c0_i32_0 = arith.constant 0 : i32
    %c0_i32_1 = arith.constant 0 : i32
    return %c0_i32, %c0_i32_0 : i32, i32
  }
  func.func @transform_4(%arg0: i32, %arg1: i32) -> (i32, i32) {
    %c0_i32 = arith.constant 0 : i32
    %c0_i32_0 = arith.constant 0 : i32
    %c0_i32_1 = arith.constant 0 : i32
    return %c0_i32, %c0_i32_0 : i32, i32
  }
  func.func @transform_5(%arg0: i32, %arg1: i32) -> (i32, i32, i32) {
    %c0_i32 = arith.constant 0 : i32
    %c0_i32_0 = arith.constant 0 : i32
    %c0_i32_1 = arith.constant 0 : i32
    %c0_i32_2 = arith.constant 0 : i32
    return %c0_i32, %c0_i32_0, %c0_i32_1 : i32, i32, i32
  }
  func.func @transform_6(%arg0: i32, %arg1: i32) -> (i32, i32) {
    %c0_i32 = arith.constant 0 : i32
    %c0_i32_0 = arith.constant 0 : i32
    %c0_i32_1 = arith.constant 0 : i32
    return %c0_i32, %c0_i32_0 : i32, i32
  }
  func.func @transform_7(%arg0: i32, %arg1: i32) -> (i32, i32) {
    %c0_i32 = arith.constant 0 : i32
    %c0_i32_0 = arith.constant 0 : i32
    %c0_i32_1 = arith.constant 0 : i32
    return %c0_i32, %c0_i32_0 : i32, i32
  }
  func.func @transform_8(%arg0: i32, %arg1: i32) -> (i32, i32, i32) {
    %c0_i32 = arith.constant 0 : i32
    %c0_i32_0 = arith.constant 0 : i32
    %c0_i32_1 = arith.constant 0 : i32
    return %arg0, %c0_i32, %c0_i32_0 : i32, i32, i32
  }
}

</mosaic_0001>

<bundles_post_ra>
// kernel: tpu_custom_call.1
= control target key start
LH: loop header
LB: loop body
LE: loop exit
PB: predicated region body
PF: predicated region fallthrough
CT: control target
= control target key end

     0   :  { %s2063_s0 = inlined_call_operand.hbm [shape: f32[2,16,32], index: 0, kind: input, shape index: {}]   ;;  %s2064_s1 = inlined_call_operand.hbm [shape: f32[2,16,16], index: 1, kind: input, shape index: {}]   ;;  %s2065_s2 = inlined_call_operand.hbm [shape: bf16[3,32,32], index: 2, kind: input, shape index: {}]   ;;  %s2066_s3 = inlined_call_operand.vmem [shape: f32[1,32], index: 3, kind: input, shape index: {}]   ;;  %s2067_s4 = inlined_call_operand.vmem [shape: f32[1,32], index: 4, kind: input, shape index: {}]   ;;  %s2068_s5 = inlined_call_operand.hbm [shape: bf16[3,32,32], index: 5, kind: input, shape index: {}]   ;;  %s2069_s6 = inlined_call_operand.vmem [shape: f32[1,32], index: 6, kind: input, shape index: {}]   ;;  %s2070_s7 = inlined_call_operand.vmem [shape: f32[1,32], index: 7, kind: input, shape index: {}]   ;;  %s2071_s8 = inlined_call_operand.hbm [shape: f32[2,16,32], index: 8, kind: output, shape index: {}]  }
   0x1   :  { %2079 = sst [smem:[#allocation21_spill]] %s2063_s0 }
   0x2   :  { %2080 = sst [smem:[#allocation22_spill]] %s2065_s2 }
   0x3   :  { %2081 = sst [smem:[#allocation23_spill]] %s2068_s5 }
   0x4   :  { %13 = vsyncpa [#allocation4], 0 }
   0x5   :  { %15 = vsyncpa [#allocation4 + $0x1], 0 }
   0x6   :  { %16 = vsyncpa [#allocation7], 0 }
   0x7   :  { %18 = vsyncpa [#allocation7 + $0x1], 0 }
   0x8   :  { %19 = vsyncpa [#allocation10], 0 }
   0x9   :  { %20 = vsyncpa [#allocation5], 0 }
   0xa   :  { %22 = vsyncpa [#allocation5 + $0x1], 0  ;;  %s1658_s27 = smov 0   ;;  %s1660_s28 = smov 0  }
   0xb   :  { %s1662_s29 = smov 0   ;;  %s1664_s30 = smov 0  }
   0xc   :  { %s1666_s9 = smov 0   ;;  %s1668_s10 = smov 0  }
   0xd LB: > { %2082 = sst [smem:[#allocation17_spill]] %s1578_s27  ;;  %s1689_s11 = sadd.s32 4294967295, %s1598_s10   ;;  %s1598_s10 = sphi %s1668_s10, %s28_s10   ;;  %s1594_s9 = sphi %s1666_s9, %s2113_s9   ;;  %s1590_s30 = sphi %s1664_s30, %s2112_s30   ;;  %s1586_s29 = sphi %s1662_s29, %s2111_s29   ;;  %s1582_s28 = sphi %s1660_s28, %s2110_s28   ;;  %s1578_s27 = sphi %s1658_s27, %s2109_s27  }
   0xe   : > { %s1141_s12 = sadd.s32 4294967294, %s1598_s10   ;;  %p60_p0 = scmp.ne.s32.totalorder %s1582_s28, %s1578_s27 }
   0xf   : > { %p2072_p1 = scmp.eq.s32.totalorder %s1689_s11, 0  ;;  %p244_p3 = scmp.eq.s32.totalorder %s1141_s12, 1 }
  0x10   : > { %p1142_p5 = scmp.ge.s32.totalorder %s1598_s10, 1  ;;  %p251_p7 = scmp.lt.s32.totalorder %s1598_s10, 3 }
  0x11   : > { %p1698_p4 = por %p2072_p1, %p60_p0  ;;  %p1703_p6 = por %p244_p3, %p60_p0 }
  0x12   : > { %p1708_p8 = pnand %p1142_p5, %p251_p7  ;;  %s1600_s16 = smov [#allocation8]  }
  0x13   : > { %s2083_s13 = scalar_select %p1698_p4, 1, 0 }
  0x14   : > { %s2084_s14 = scalar_select %p1703_p6, 1, 0 }
  0x15   : > { %s263_s17 = sshll.u32 %s1600_s16, 4  ;;  %p1293_p9 = pneg %p1708_p8  ;;  %s1712_s17 = int_to_ptr.vmem [resolvable:$true] %s263_s17 }
  0x16   : > { %2085 = sst [smem:[#allocation18_spill]] %s2084_s14  ;;  %s1601_s19 = smov [#allocation9]  }
  0x17   : > { %p1719_p11 = pnand %p1293_p9, %p2072_p1  ;;  %s282_s20 = sshll.u32 %s1601_s19, 4  ;;  %s1723_s20 = int_to_ptr.vmem [resolvable:$true] %s282_s20 }
  0x18   : > { %s2088_s2 = sld [smem:[#allocation22_spill]] }
  0x19   : > { %p1390_p13 = pneg %p1719_p11 }
  0x1e   : > { %s1388_s23 = scalar_lea.hbm %s2088_s2, 768 }
  0x1f   : > { %p1389_p12 = scmp.ne.s32.totalorder %s2088_s2, %s1388_s23  ;;  %p1395_p5 = scmp.lt.u32.totalorder %s1388_s23, %s2088_s2 }
  0x21   : > { %p1391_p0 = pnand %p1390_p13, %p1389_p12 }
  0x23   : > { %p1392_p3 = pneg %p1391_p0 }
  0x25   : > { %p1397_p7 = pnand %p1395_p5, %p1392_p3 }
  0x27   : > { %1400 = shalt.err (!%p1397_p7)
}
  0x28   : > { %s1401_s16 = scalar_lea.vmem %s1712_s17, 768  ;;  %p1409_p2 = scmp.lt.s32.totalorder %s1712_s17, %s1712_s17 }
  0x29   : > { %p1402_p9 = scmp.ne.s32.totalorder %s1712_s17, %s1401_s16  ;;  %p1410_p12 = scmp.lt.s32.totalorder %s1401_s16, %s1401_s16 }
  0x2b   : > { %p1404_p10 = pnand %p1402_p9, %p1390_p13  ;;  %p1411_p0 = por %p1410_p12, %p1409_p2 }
  0x2d   : > { %p1405_p1 = pneg %p1404_p10 }
  0x2f   : > { %p1412_p6 = pnand %p1411_p0, %p1405_p1 }
  0x31   : > { %1415 = shalt.err (!%p1412_p6)
}
  0x32   : > { %s1602_s19 = smov 64   ;;  %s1603_s21 = smov 4  }
  0x33   : > { %1296 = dma.hbm_to_vmem [thread:$0]  (!%p1719_p11), %s2088_s2, 768, %s1712_s17, [#allocation7], %s1602_s19, %s1602_s19, %s1603_s21  }
  0x34   : > { %s2089_s5 = sld [smem:[#allocation23_spill]] }
  0x3a   : > { %s1416_s26 = scalar_lea.hbm %s2089_s5, 768 }
  0x3b   : > { %p1417_p2 = scmp.ne.s32.totalorder %s2089_s5, %s1416_s26  ;;  %p1423_p10 = scmp.lt.u32.totalorder %s1416_s26, %s2089_s5 }
  0x3d   : > { %p1419_p1 = pnand %p1417_p2, %p1390_p13 }
  0x3f   : > { %p1420_p6 = pneg %p1419_p1 }
  0x41   : > { %p1425_p3 = pnand %p1423_p10, %p1420_p6 }
  0x43   : > { %1428 = shalt.err (!%p1425_p3)
}
  0x44   : > { %s1429_s17 = scalar_lea.vmem %s1723_s20, 768  ;;  %p1437_p12 = scmp.lt.s32.totalorder %s1723_s20, %s1723_s20 }
  0x45   : > { %p1430_p5 = scmp.ne.s32.totalorder %s1723_s20, %s1429_s17  ;;  %p1438_p0 = scmp.lt.s32.totalorder %s1429_s17, %s1429_s17 }
  0x47   : > { %p1432_p7 = pnand %p1430_p5, %p1390_p13  ;;  %p1439_p2 = por %p1438_p0, %p1437_p12 }
  0x49   : > { %p1433_p9 = pneg %p1432_p7 }
  0x4b   : > { %p1440_p1 = pnand %p1439_p2, %p1433_p9 }
  0x4d   : > { %1443 = shalt.err (!%p1440_p1)
}
  0x4e   : > { %1299 = dma.hbm_to_vmem [thread:$0]  (!%p1719_p11), %s2089_s5, 768, %s1723_s20, [#allocation10], %s1602_s19, %s1602_s19, %s1603_s21  }
  0x4f   : > { %s40_s22 = sadd.s32 1, %s1594_s9  ;;  %s47_s23 = sadd.s32 1, %s1586_s29 }
  0x50   : > { %p42_p13 = scmp.ge.s32.totalorder %s40_s22, 2  ;;  %p54_p6 = scmp.ne.s32.totalorder %s1586_s29, %s1582_s28 }
  0x51   : > { %p55_p10 = scmp.eq.s32.totalorder %s1598_s10, 0  ;;  %p1313_p3 = scmp.lt.s32.totalorder %s1598_s10, 2 }
  0x52   : > { %s2115_s22 = smov (%p42_p13, %s40_s22), 0  ;;  %p2091_p7 = scmp.eq.s32.totalorder %s1689_s11, 1 }
  0x53   : > { %2090 = sst [smem:[#allocation19_spill]] %s2115_s22  ;;  %p56_p5 = por %p55_p10, %p54_p6 }
  0x54   : > { %p1787_p9 = por %p2091_p7, %p54_p6  ;;  %s44_s24 = ssub.s32 %s1594_s9, %s2115_s22 }
  0x55   : > { %s302_s25 = sand.u32 1, %s1586_s29   ;;  %p45_p11 = scmp.eq.s32.totalorder %s44_s24, 0 }
  0x56   : > { %s2092_s18 = scalar_select %p1787_p9, 1, 0 }
  0x57   : > { %s1794_s20 = sshll.u32 %s302_s25, 4  ;;  %s2075_s19 = sshll.u32 %s1594_s9, 8 }
  0x58   : > { %s1798_s21 = scalar_select %p45_p11, %s1586_s29, %s47_s23  }
  0x59   : > { %s2094_s0 = sld [smem:[#allocation21_spill]]  ;;  %s306_s17 = scalar_lea.vmem [#allocation3], %s1794_s20 }
  0x5a   : > { %2093 = sst [smem:[#allocation20_spill]] %s1798_s21  ;;  %s313_s27 = sshll.u32 %s306_s17, 4  ;;  %s1814_s27 = int_to_ptr.vmem [resolvable:$true] %s313_s27 }
  0x5b   : > { %p1810_p12 = pnand %p1313_p3, %p56_p5  ;;  %s1816_s23 = scalar_lea.sflag [#allocation4], %s302_s25 }
  0x5d   : > { %p1446_p2 = pneg %p1810_p12 }
  0x5f   : > { %s1805_s16 = scalar_lea.hbm %s2094_s0, %s2075_s19  ;;  %s1449_s17 = scalar_lea.hbm %s2094_s0, 512 }
  0x60   : > { %s1444_s24 = scalar_lea.hbm %s1805_s16, 256  ;;  %p1450_p6 = scmp.lt.u32.totalorder %s1805_s16, %s2094_s0 }
  0x61   : > { %p1445_p0 = scmp.ne.s32.totalorder %s1805_s16, %s1444_s24  ;;  %p1451_p10 = scmp.lt.u32.totalorder %s1449_s17, %s1444_s24 }
  0x62   : > { %p1453_p5 = scmp.lt.u32.totalorder %s1444_s24, %s1805_s16 }
  0x63   : > { %p1447_p1 = pnand %p1446_p2, %p1445_p0  ;;  %p1452_p3 = por %p1451_p10, %p1450_p6 }
  0x65   : > { %p1448_p13 = pneg %p1447_p1  ;;  %p1454_p7 = por %p1453_p5, %p1452_p3 }
  0x67   : > { %p1455_p11 = pnand %p1454_p7, %p1448_p13 }
  0x69   : > { %1458 = shalt.err (!%p1455_p11)
}
  0x6a   : > { %s1459_s25 = scalar_lea.vmem %s1814_s27, 256  ;;  %s1604_s26 = smov [#allocation3]  }
  0x6b   : > { %p1460_p0 = scmp.ne.s32.totalorder %s1814_s27, %s1459_s25  ;;  %s1464_s12 = sshll.u32 %s1604_s26, 4  ;;  %s1465_s12 = int_to_ptr.vmem [resolvable:$false] %s1464_s12 }
  0x6c   : > { %s1466_s2 = scalar_lea.vmem %s1465_s12, 512  ;;  %p1467_p4 = scmp.lt.s32.totalorder %s1814_s27, %s1465_s12 }
  0x6d   : > { %p1462_p1 = pnand %p1460_p0, %p1446_p2  ;;  %p1468_p6 = scmp.lt.s32.totalorder %s1466_s2, %s1459_s25 }
  0x6f   : > { %p1463_p9 = pneg %p1462_p1  ;;  %p1469_p10 = por %p1468_p6, %p1467_p4 }
  0x71   : > { %p1470_p3 = pnand %p1469_p10, %p1463_p9 }
  0x73   : > { %1473 = shalt.err (!%p1470_p3)
}
  0x74   : > { %s1605_s19 = smov 128   ;;  %s1606_s24 = smov 8  }
  0x75   : > { %1303 = dma.hbm_to_vmem [thread:$0]  (!%p1810_p12), %s1805_s16, 256, %s1814_s27, %s1816_s23, %s1605_s19, %s1605_s19, %s1606_s24  }
  0x76   : > { %s2096_s17 = sshll.u32 %s1594_s9, 8  ;;  %s327_s2 = scalar_lea.vmem [#allocation6], %s1794_s20 }
  0x77   : > { %s1852_s12 = scalar_lea.hbm %s2064_s1, %s2096_s17  ;;  %s336_s0 = sshll.u32 %s327_s2, 4  ;;  %s1856_s0 = int_to_ptr.vmem [resolvable:$true] %s336_s0 }
  0x78   : > { %s323_s5 = sand.u32 1, %s1598_s10   ;;  %s1474_s21 = scalar_lea.hbm %s1852_s12, 256 }
  0x79   : > { %s1858_s22 = scalar_lea.sflag [#allocation7], %s323_s5  ;;  %p1475_p4 = scmp.ne.s32.totalorder %s1852_s12, %s1474_s21 }
  0x7a   : > { %s1479_s23 = scalar_lea.hbm %s2064_s1, 512  ;;  %p1480_p5 = scmp.lt.u32.totalorder %s1852_s12, %s2064_s1 }
  0x7b   : > { %p1477_p9 = pnand %p1475_p4, %p1446_p2  ;;  %p1481_p7 = scmp.lt.u32.totalorder %s1479_s23, %s1474_s21 }
  0x7c   : > { %p1483_p0 = scmp.lt.u32.totalorder %s1474_s21, %s1852_s12 }
  0x7d   : > { %p1478_p13 = pneg %p1477_p9  ;;  %p1482_p11 = por %p1481_p7, %p1480_p5 }
  0x7f   : > { %p1484_p1 = por %p1483_p0, %p1482_p11 }
  0x81   : > { %p1485_p6 = pnand %p1484_p1, %p1478_p13 }
  0x83   : > { %1488 = shalt.err (!%p1485_p6)
}
  0x84   : > { %s1489_s5 = scalar_lea.vmem %s1856_s0, 256  ;;  %s1607_s20 = smov [#allocation6]  }
  0x85   : > { %p1490_p10 = scmp.ne.s32.totalorder %s1856_s0, %s1489_s5  ;;  %s1494_s26 = sshll.u32 %s1607_s20, 4  ;;  %s1495_s26 = int_to_ptr.vmem [resolvable:$false] %s1494_s26 }
  0x86   : > { %s1496_s2 = scalar_lea.vmem %s1495_s26, 512  ;;  %p1497_p9 = scmp.lt.s32.totalorder %s1856_s0, %s1495_s26 }
  0x87   : > { %p1492_p3 = pnand %p1490_p10, %p1446_p2  ;;  %p1498_p5 = scmp.lt.s32.totalorder %s1496_s2, %s1489_s5 }
  0x89   : > { %p1493_p4 = pneg %p1492_p3  ;;  %p1499_p7 = por %p1498_p5, %p1497_p9 }
  0x8b   : > { %p1500_p11 = pnand %p1499_p7, %p1493_p4 }
  0x8d   : > { %1503 = shalt.err (!%p1500_p11)
}
  0x8e   : > { %1306 = dma.hbm_to_vmem [thread:$0]  (!%p1810_p12), %s1852_s12, 256, %s1856_s0, %s1858_s22, %s1605_s19, %s1605_s19, %s1606_s24  }
  0x8f   : > { %348 = sbr.rel (%p1708_p8) target bundleno = 1001 (0x3e9), region = 52  ;;  %s1890_s21 = sand.u32 (!%p1708_p8), 1, %s1582_s28  }
  0x90   : > { %s1893_s16 = sshll.u32 (!%p1708_p8), %s1890_s21, 4  ;;  %s351_s14 = scalar_lea.sflag (!%p1708_p8), [#allocation4], %s1890_s21 }
  0x91   : > { %s354_s27 = scalar_lea.vmem (!%p1708_p8), [#allocation3], %s1893_s16  ;;  %p2097_p2 = scmp.ne.s32.totalorder (!%p1708_p8), %s2083_s13, 0 }
  0x96   : > { %1557 = dma.done.wait (%p2097_p2), %s351_s14, 256  }
  0x97   : > { %1559 = vsyncadd (%p2097_p2), %s351_s14, 4294967040  ;;  %s359_s0 = sand.u32 1, %s1689_s11   ;;  %s363_s22 = scalar_lea.vmem [#allocation6], %s1893_s16 }
  0x98   : > { %s360_s15 = scalar_lea.sflag [#allocation7], %s359_s0 }
  0x99   : > { %1561 = dma.done.wait (%p2097_p2), %s360_s15, 256  }
  0x9a   : > { %1563 = vsyncadd (%p2097_p2), %s360_s15, 4294967040  ;;  %p2098_p8 = scmp.eq.s32.totalorder %s1689_s11, 0 }
  0x9c   : > { %1565 = dma.done.wait (%p2098_p8), [#allocation7], 768   ;;  %p2099_p12 = pmov %p2098_p8 }
  0x9d   : > { %p2100_p13 = pmov %p2098_p8 }
  0x9e   : > { %1567 = vsyncadd (%p2099_p12), [#allocation7], 4294966528 }
  0x9f   : > { %1569 = dma.done.wait (%p2100_p13), [#allocation10], 768   ;;  %p2101_p0 = pmov %p2098_p8 }
  0xa0   : > { %v1608_v0 = vmov 0.0   ;;  %vm1609_vm0 = vmmov 0   ;;  %vm415_vm1 = vcmask 261120   ;;  %v419_v1 = vld [vmem:[%s363_s22] sm:$0xff]  ;;  %v420_v2 = vld [vmem:[%s363_s22 + $0x8] sm:$0xff]  ;;  %vm442_vm2 = vcmask 130048  }
  0xa1   : > { %1571 = vsyncadd (%p2101_p0), [#allocation10], 4294966528  ;;  %1209 = vmatprep.subr.bf16.mxu0 %v1608_v0  ;;  %1211 = vmatprep.mubr.msk.bf16.mxu0 %vm1609_vm0, %v1608_v0  ;;  %416 = vst.msk [vmem:[#allocation2] sm:$0xff] %vm415_vm1, %v1608_v0  ;;  %v1925_v3 = vld [vmem:[%s354_s27] sm:$0xff]  ;;  %v421_v4 = vpack.c.bf16 %v420_v2, %v419_v1  ;;  %v1927_v5 = vld [vmem:[%s354_s27 + $0x8] sm:$0xff]  ;;  %v531_v18 = vlaneseq  ;;  %s1188_s5 = sshll.u32 %s1590_s30, 8 }
  0xa2   : > { %417 = vst.msk [vmem:[#allocation2 + $0x8] sm:$0xff] %vm415_vm1, %v1608_v0  ;;  %1215 = vmatprep.subr.bf16.mxu1 %v1608_v0  ;;  %1219 = vmatprep.mubr.msk.bf16.mxu1 %vm1609_vm0, %v1608_v0  ;;  %v425_v6 = vpack.c.bf16 %v1927_v5, %v1925_v3  ;;  %v1376_v8 = vld [vmem:[#allocation8 + $0x10] sm:$0xff]   ;;  %v1377_v9 = vld [vmem:[#allocation8 + $0x18] sm:$0xff]   ;;  %v1378_v23 = vld [vmem:[#allocation8] sm:$0xff]   ;;  %s408_s20 = scalar_lea.vmem [#allocation11], %s1893_s16  ;;  %s2010_s27 = scalar_lea.hbm %s2071_s8, %s1188_s5 }
  0xa3   : > { %426 = vxpose.xlu0.c.b16.start.end [1/1] (short) (narrow) %v421_v4, 16  ;;  %1216 = vmatpush3.bf16.msra.mxu1 %v1376_v8  ;;  %v1938_v19 = vshrl.u32 %v531_v18, 7  ;;  %v1379_v27 = vld [vmem:[#allocation8 + $0x8] sm:$0xff]   ;;  %v1380_v34 = vld [vmem:[#allocation8 + $0x20] sm:$0xff]   ;;  %v1168_v46 = vld [vmem:[%s2066_s3] ss:$0 sm:$0xff] }
  0xa4   : > { %1210 = vmatpush3.bf16.msra.mxu0 %v425_v6  ;;  %1217 = vmatprep.subr.bf16.mxu1 %v1608_v0  ;;  %v1381_v38 = vld [vmem:[#allocation8 + $0x28] sm:$0xff]   ;;  %v1382_v44 = vld [vmem:[#allocation9 + $0x10] sm:$0xff]   ;;  %v1169_v47 = vld [vmem:[%s2067_s4] ss:$0 sm:$0xff]  ;;  %s1012_s26 = sshll.u32 %s408_s20, 4  ;;  %s999_s30 = scalar_lea.sflag [#allocation5], %s1890_s21  ;;  %s2012_s26 = int_to_ptr.vmem [resolvable:$true] %s1012_s26 }
  0xa5   : > { %1239 = vmatprep.subr.bf16.mxu0 %v1608_v0  ;;  %v538_v20 = vand.u32 15, %v1938_v19  ;;  %vm560_vm3 = vcmp.lt.s32.totalorder %v1938_v19, 1  ;;  %v533_v30 = vadd.s32 8, %v1938_v19  ;;  %vm693_vm5 = vcmp.lt.s32.totalorder %v1938_v19, 7  ;;  %v1383_v45 = vld [vmem:[#allocation9 + $0x18] sm:$0xff]   ;;  %v1384_v59 = vld [vmem:[#allocation9] sm:$0xff]  }
  0xa6   : > { %s1504_s16 = scalar_lea.vmem %s2012_s26, 256  ;;  %p2102_p6 = scmp.ne.s32.totalorder %s2092_s18, 0 }
  0xa7   : > { %1218 = vmatpush3.bf16.msra.mxu1 %v1377_v9  ;;  %v1942_v26 = vadd.s32 4294967295, %v538_v20  ;;  %v545_v33 = vand.u32 15, %v533_v30  ;;  %p1505_p1 = scmp.ne.s32.totalorder %s2012_s26, %s1504_s16  ;;  %s1610_s0 = smov [#allocation11]  }
  0xa8   : > { %1223 = vmatprep.subr.bf16.mxu1 %v1608_v0  ;;  %v487_v10 = vld [vmem:[#allocation2] sm:$0xff]  ;;  %s1508_s15 = sshll.u32 %s1610_s0, 4  ;;  %s1509_s15 = int_to_ptr.vmem [resolvable:$false] %s1508_s15 }
  0xa9   : > { %v488_v12 = vld [vmem:[#allocation2 + $0x8] sm:$0xff]  ;;  %vm565_vm4 = vcmp.ge.s32.totalorder %v1942_v26, 0  ;;  %v697_v37 = vadd.s32 1, %v545_v33  ;;  %p1506_p10 = pnand %p1505_p1, %p2102_p6  ;;  %s1510_s22 = scalar_lea.vmem %s1509_s15, 512 }
  0xaa   : > { %p1511_p4 = scmp.lt.s32.totalorder %s2012_s26, %s1509_s15  ;;  %p1512_p9 = scmp.lt.s32.totalorder %s1510_s22, %s1504_s16 }
  0xab   : > { %vm701_vm6 = vcmp.lt.s32.totalorder %v697_v37, 16  ;;  %p1507_p3 = pneg %p1506_p10 }
  0xac   : > { %p1513_p5 = por %p1512_p9, %p1511_p4 }
  0xae   : > { %p1514_p7 = pnand %p1513_p5, %p1507_p3 }
 0x109   : > { %v434_v7 = vpop.trf.xlu0 }
 0x10a   : > { %1212 = vmatmul.mubr.msk.bf16.vlgmr.msra.gmra.mrb[0].mxu0 %vm442_vm2, %v434_v7  ;;  %v1385_v7 = vld [vmem:[#allocation9 + $0x8] sm:$0xff]  }
 0x10b   : > { %1243 = vmatprep.mubr.msk.bf16.mxu0 %vm1609_vm0, %v1608_v0  ;;  %1240 = vmatpush3.bf16.msra.mxu0 %v1382_v44 }
 0x10c   : > { %1241 = vmatprep.subr.bf16.mxu0 %v1608_v0 }
 0x10f   : > { %1242 = vmatpush3.bf16.msra.mxu0 %v1383_v45 }
 0x110   : > { %1247 = vmatprep.subr.bf16.mxu0 %v1608_v0 }
 0x1dd   : > { %v480_v11 = vpop.f32.mrb[0].mxu0 }
 0x1de   : > { %v489_v13 = vadd.f32 %v487_v10, %v480_v11  ;;  %v1213_v14 = vpop.f32.mrb[1].mxu0 }
 0x1df   : > { %v483_v15 = vpop.f32.mrb[2].mxu0  ;;  %v1179_v14 = vld [vmem:[%s2069_s6] ss:$0 sm:$0xff] }
 0x1e0   : > { %492 = vst.msk [vmem:[#allocation2] sm:$0xff] %vm415_vm1, %v489_v13  ;;  %v490_v16 = vadd.f32 %v488_v12, %v483_v15  ;;  %v1214_v17 = vpop.f32.mrb[3].mxu0  ;;  %v1386_v12 = vld [vmem:[#allocation9 + $0x20] sm:$0xff]   ;;  %v1387_v13 = vld [vmem:[#allocation9 + $0x28] sm:$0xff]  }
 0x1e1   : > { %v1180_v15 = vld [vmem:[%s2070_s7] ss:$0 sm:$0xff] }
 0x1e2   : > { %493 = vst.msk [vmem:[#allocation2 + $0x8] sm:$0xff] %vm415_vm1, %v490_v16 }
 0x1e7   : > { %v529_v21 = vld [vmem:[#allocation2] sm:$0xff] }
 0x1e8   : > { %v558_v28 = vrot.slane %v529_v21, 7  ;;  %v691_v39 = vrot.slane %v529_v21, 1 }
 0x1e9   : > { %v530_v22 = vld [vmem:[#allocation2 + $0x8] sm:$0xff] }
 0x1ea   : > { %v578_v24 = vpack.c.bf16 %v530_v22, %v529_v21  ;;  %v559_v25 = vrot.slane %v530_v22, 7  ;;  %v692_v36 = vrot.slane %v530_v22, 1 }
 0x1ec   : > { %1220 = vmatmul.mubr.msk.bf16.vlgmr.msra.gmra.mrb[0].mxu1 %vm415_vm1, %v578_v24  ;;  %v562_v29 = vsel %vm560_vm3, %v559_v25, %v558_v28  ;;  %v561_v31 = vsel %vm560_vm3, %v558_v28, %v559_v25  ;;  %v695_v40 = vsel %vm693_vm5, %v692_v36, %v691_v39  ;;  %v694_v41 = vsel %vm693_vm5, %v691_v39, %v692_v36 }
 0x1ed   : > { %1224 = vmatpush3.bf16.msra.mxu1 %v1378_v23  ;;  %1227 = vmatprep.mubr.msk.bf16.mxu1 %vm1609_vm0, %v1608_v0  ;;  %v575_v32 = vsel %vm565_vm4, %v562_v29, 0.0  ;;  %v709_v42 = vsel %vm701_vm6, %v695_v40, 0.0 }
 0x1ee   : > { %1225 = vmatprep.subr.bf16.mxu1 %v1608_v0  ;;  %v577_v35 = vpack.c.bf16 %v561_v31, %v575_v32  ;;  %v710_v43 = vpack.c.bf16 %v709_v42, %v694_v41 }
 0x1f1   : > { %1226 = vmatpush3.bf16.msra.mxu1 %v1379_v27 }
 0x1f2   : > { %1231 = vmatprep.subr.bf16.mxu1 %v1608_v0 }
 0x1f8   : > { %1228 = vmatmul.mubr.msk.bf16.vlgmr.msra.gmra.mrb[0].mxu1 %vm415_vm1, %v577_v35 }
 0x1f9   : > { %1232 = vmatpush3.bf16.msra.mxu1 %v1380_v34  ;;  %1235 = vmatprep.mubr.msk.bf16.mxu1 %vm1609_vm0, %v1608_v0 }
 0x1fa   : > { %1233 = vmatprep.subr.bf16.mxu1 %v1608_v0 }
 0x1fd   : > { %1234 = vmatpush3.bf16.msra.mxu1 %v1381_v38 }
 0x204   : > { %1236 = vmatmul.mubr.msk.bf16.vlgmr.msra.gmra.mrb[0].mxu1 %vm415_vm1, %v710_v43 }
 0x2d7   : > { %v760_v48 = vpop.f32.mrb[0].mxu1 }
 0x2d8   : > { %v775_v49 = vmul.f32 %v1168_v46, %v760_v48  ;;  %v1237_v50 = vpop.f32.mrb[1].mxu1 }
 0x2d9   : > { %v763_v51 = vpop.f32.mrb[2].mxu1 }
 0x2da   : > { %v783_v52 = vadd.f32 %v1169_v47, %v775_v49  ;;  %v776_v53 = vmul.f32 %v1168_v46, %v763_v51  ;;  %v1238_v54 = vpop.f32.mrb[3].mxu1 }
 0x2dc   : > { %v785_v55 = vmax.f32 %v783_v52, 0.0  ;;  %v784_v56 = vadd.f32 %v1169_v47, %v776_v53 }
 0x2de   : > { %v786_v57 = vmax.f32 %v784_v56, 0.0  ;;  %v787_v58 = vrot.slane %v785_v55, 7  ;;  %v907_v60 = vrot.slane %v785_v55, 1 }
 0x2e0   : > { %v788_v61 = vrot.slane %v786_v57, 7  ;;  %v794_v62 = vpack.c.bf16 %v786_v57, %v785_v55  ;;  %v908_v63 = vrot.slane %v786_v57, 1 }
 0x2e2   : > { %v789_v1 = vsel %vm560_vm3, %v787_v58, %v788_v61  ;;  %v790_v2 = vsel %vm560_vm3, %v788_v61, %v787_v58  ;;  %v909_v4 = vsel %vm693_vm5, %v907_v60, %v908_v63  ;;  %v910_v6 = vsel %vm693_vm5, %v908_v63, %v907_v60  ;;  %1244 = vmatmul.mubr.msk.bf16.vlgmr.msra.gmra.mrb[4].mxu0 %vm415_vm1, %v794_v62 }
 0x2e3   : > { %1248 = vmatpush3.bf16.msra.mxu0 %v1384_v59  ;;  %1251 = vmatprep.mubr.msk.bf16.mxu0 %vm1609_vm0, %v1608_v0  ;;  %v791_v8 = vsel %vm565_vm4, %v790_v2, 0.0  ;;  %v912_v9 = vsel %vm701_vm6, %v910_v6, 0.0 }
 0x2e4   : > { %1249 = vmatprep.subr.bf16.mxu0 %v1608_v0  ;;  %v793_v10 = vpack.c.bf16 %v789_v1, %v791_v8  ;;  %v913_v11 = vpack.c.bf16 %v912_v9, %v909_v4 }
 0x2e7   : > { %1250 = vmatpush3.bf16.msra.mxu0 %v1385_v7 }
 0x2e8   : > { %1255 = vmatprep.subr.bf16.mxu0 %v1608_v0 }
 0x2ee   : > { %1252 = vmatmul.mubr.msk.bf16.vlgmr.msra.gmra.mrb[4].mxu0 %vm415_vm1, %v793_v10 }
 0x2ef   : > { %1256 = vmatpush3.bf16.msra.mxu0 %v1386_v12  ;;  %1259 = vmatprep.mubr.msk.bf16.mxu0 %vm1609_vm0, %v1608_v0 }
 0x2f0   : > { %1257 = vmatprep.subr.bf16.mxu0 %v1608_v0 }
 0x2f3   : > { %1258 = vmatpush3.bf16.msra.mxu0 %v1387_v13 }
 0x2fa   : > { %1260 = vmatmul.mubr.msk.bf16.vlgmr.msra.gmra.mrb[4].mxu0 %vm415_vm1, %v913_v11 }
 0x3cd   : > { %v963_v16 = vpop.f32.mrb[4].mxu0 }
 0x3ce   : > { %v978_v17 = vmul.f32 %v1179_v14, %v963_v16  ;;  %v1261_v18 = vpop.f32.mrb[5].mxu0 }
 0x3cf   : > { %v966_v19 = vpop.f32.mrb[6].mxu0 }
 0x3d0   : > { %v986_v20 = vadd.f32 %v1180_v15, %v978_v17  ;;  %v979_v21 = vmul.f32 %v1179_v14, %v966_v19  ;;  %v1262_v0 = vpop.f32.mrb[7].mxu0 }
 0x3d2   : > { %v988_v22 = vmax.f32 %v986_v20, 0.0  ;;  %v987_v23 = vadd.f32 %v1180_v15, %v979_v21 }
 0x3d4   : > { %v992_v24 = vadd.f32 %v988_v22, %v1925_v3  ;;  %v989_v25 = vmax.f32 %v987_v23, 0.0 }
 0x3d6   : > { %v994_v26 = vmax.f32 %v992_v24, 0.0  ;;  %v993_v27 = vadd.f32 %v989_v25, %v1927_v5 }
 0x3d8   : > { %996 = vst.msk [vmem:[%s408_s20] sm:$0xff] %vm415_vm1, %v994_v26  ;;  %v995_v3 = vmax.f32 %v993_v27, 0.0 }
 0x3da   : > { %997 = vst.msk [vmem:[%s408_s20 + $0x8] sm:$0xff] %vm415_vm1, %v995_v3 }
 0x3db   : > { %1517 = shalt.err (!%p1514_p7)
}
 0x3dc   : > { %s1518_s11 = scalar_lea.hbm %s2010_s27, 256  ;;  %s1522_s24 = scalar_lea.hbm %s2071_s8, 512 }
 0x3dd   : > { %p1519_p11 = scmp.ne.s32.totalorder %s2010_s27, %s1518_s11  ;;  %p1523_p12 = scmp.lt.u32.totalorder %s2010_s27, %s2071_s8 }
 0x3de   : > { %p1524_p13 = scmp.lt.u32.totalorder %s1522_s24, %s1518_s11  ;;  %p1526_p1 = scmp.lt.u32.totalorder %s1518_s11, %s2010_s27 }
 0x3df   : > { %p1520_p2 = pnand %p1519_p11, %p2102_p6 }
 0x3e0   : > { %p1525_p0 = por %p1524_p13, %p1523_p12 }
 0x3e1   : > { %p1521_p8 = pneg %p1520_p2 }
 0x3e2   : > { %p1527_p10 = por %p1526_p1, %p1525_p0 }
 0x3e4   : > { %p1528_p3 = pnand %p1527_p10, %p1521_p8 }
 0x3e6   : > { %1531 = shalt.err (!%p1528_p3)
}
 0x3e7   : > { %s1611_s17 = smov 128   ;;  %s1612_s25 = smov 8  }
 0x3e8   : > { %1291 = dma.vmem_to_hbm [thread:$0]  (%p2102_p6), %s2012_s26, 256, %s2010_s27, %s999_s30, %s1611_s17, %s1611_s17, %s1612_s25  }
 0x3e9 PF: > { %s2103_s5 = sld [smem:[#allocation17_spill]]  ;;  %s2104_s20 = sld [smem:[#allocation18_spill]] }
 0x3ea   : > { %p2106_p9 = scmp.ge.s32.totalorder %s1598_s10, 2 }
 0x3ef   : > { %s1027_s2 = sand.u32 1, %s2103_s5   ;;  %p2105_p4 = scmp.ne.s32.totalorder %s2104_s20, 0 }
 0x3f0   : > { %s1028_s14 = scalar_lea.sflag [#allocation5], %s1027_s2 }
 0x3f1   : > { %p1308_p5 = pnand %p2106_p9, %p2105_p4 }
 0x3f3   : > { %1573 = dma.done.wait (!%p1308_p5), %s1028_s14, 256  }
 0x3f4   : > { %1575 = vsyncadd (!%p1308_p5), %s1028_s14, 4294967040  ;;  %s28_s10 = sadd.s32 1, %s1598_s10   ;;  %s2107_s16 = sld [smem:[#allocation20_spill]] }
 0x3f5   : > { %p25_p7 = scmp.ge.s32.totalorder %s28_s10, 4   ;;  %s2108_s18 = sld [smem:[#allocation19_spill]] }
 0x3f6   : > { %s2109_s27 = smov %s1582_s28  ;;  %s2110_s28 = smov %s1586_s29 }
 0x3f7   : > { %s2112_s30 = smov %s1594_s9  ;;  %27 = sbr.rel (!%p25_p7) target bundleno = 13 (0xd), region = 131 }
 0x3fa   : > { %s2111_s29 = smov %s2107_s16 }
 0x3fb   : > { %s2113_s9 = smov %s2108_s18 }
 0x3fe   :  { %1033 = vsyncpa [#allocation4], 1 }
 0x3ff   :  { %1035 = vsyncpa [#allocation4 + $0x1], 1 }
 0x400   :  { %1036 = vsyncpa [#allocation7], 1 }
 0x401   :  { %1038 = vsyncpa [#allocation7 + $0x1], 1 }
 0x402   :  { %1039 = vsyncpa [#allocation10], 1 }
 0x403   :  { %1040 = vsyncpa [#allocation5], 1 }
 0x404   :  { %1042 = vsyncpa [#allocation5 + $0x1], 1 }

</bundles_post_ra>
